<compile_context>
chip_gen: v7x
topology: tpu7x:2x2x1
jax: 0.10.0
libtpu: 0.0.40
codegen_flags: <defaults>
</compile_context>

<pallas_src>
import functools

import jax
import jax.numpy as jnp
from jax import lax
from jax.experimental import pallas as pl
from jax.experimental.pallas import tpu as pltpu

EPS = 1e-5  # nn.BatchNorm2d default


def _round_up(a, b):
    return (a + b - 1) // b * b


def _vmem_capacity_bytes():
    try:
        return int(pltpu.get_tpu_info().vmem_capacity_bytes)
    except Exception:
        return 64 * 1024 * 1024  # conservative: v7x physical VMEM per core


# ----------------------------------------------------------------------------
# In-kernel "im2col": 2x2 stride-1 conv over the parity (space-to-depth) band.
# band_ref block: (1, R_in_pad, 4*Cin) bf16; w_ref block: (4, 4*Cin, COUT_PAD) bf16.
# Output row r0 = ho*(Wo+1) + wo needs band rows r0 + a*(Wo+1) + b, a,b in {0,1}.
# ----------------------------------------------------------------------------
def _conv_image(band_ref, w_ref, *, wh, r_out):
    conv = None
    for a in range(2):
        for b in range(2):
            t = a * 2 + b
            s = a * wh + b                       # static row shift of the band
            lhs = band_ref[0, pl.ds(s, r_out), :]
            part = jnp.dot(lhs, w_ref[t], preferred_element_type=jnp.float32)
            conv = part if conv is None else conv + part
    return conv                                   # (r_out, COUT_PAD) f32


# ----------------------------------------------------------------------------
# Variant A: conv cached in VMEM (input read once, exact two-pass BatchNorm).
# grid = (3 phases, N images); scratch persists across the grid.
# ----------------------------------------------------------------------------
def _kernel_cached(band_ref, w_ref, mask_ref, gamma_ref, beta_ref, out_ref,
                   cache_ref, sum_ref, sumsq_ref, mean_ref, scale_ref, shift_ref,
                   *, wh, r_out, inv_m):
    phase = pl.program_id(0)
    n = pl.program_id(1)

    # ---- phase 0: conv (in-kernel im2col), mask junk rows, cache, accumulate sum ----
    @pl.when(jnp.logical_and(phase == 0, n == 0))
    def _init_sum():
        sum_ref[...] = jnp.zeros_like(sum_ref)

    @pl.when(phase == 0)
    def _conv_and_sum():
        conv = _conv_image(band_ref, w_ref, wh=wh, r_out=r_out) * mask_ref[...]
        cache_ref[n] = conv
        sum_ref[...] += jnp.sum(conv, axis=0, keepdims=True)

    # ---- phase 1: exact two-pass variance, pure VPU sweep over the VMEM cache ----
    @pl.when(jnp.logical_and(phase == 1, n == 0))
    def _finalize_mean():
        mean_ref[...] = sum_ref[...] * inv_m
        sumsq_ref[...] = jnp.zeros_like(sumsq_ref)

    @pl.when(phase == 1)
    def _accumulate_var():
        d = (cache_ref[n] - mean_ref[...]) * mask_ref[...]
        sumsq_ref[...] += jnp.sum(d * d, axis=0, keepdims=True)

    # ---- phase 2: finalize scale/shift once, normalize + ReLU, lane-dense bf16 store ----
    @pl.when(jnp.logical_and(phase == 2, n == 0))
    def _finalize_scale():
        var = jnp.maximum(sumsq_ref[...] * inv_m, 0.0)
        scale = gamma_ref[...] * lax.rsqrt(var + EPS)
        scale_ref[...] = scale
        shift_ref[...] = beta_ref[...] - mean_ref[...] * scale

    @pl.when(phase == 2)
    def _normalize_store():
        y = cache_ref[n] * scale_ref[...] + shift_ref[...]
        out_ref[0] = jnp.maximum(y, 0.0).astype(out_ref.dtype)


# ----------------------------------------------------------------------------
# Variant B: streaming fallback (cache does not fit VMEM).  Two phases; phase 1
# recomputes the cheap conv.  Variance uses shifted sums (first-image mean as the
# reference) to avoid E[x^2]-E[x]^2 cancellation in f32.
# ----------------------------------------------------------------------------
def _kernel_stream(band_ref, w_ref, mask_ref, gamma_ref, beta_ref, out_ref,
                   ref_mean_ref, sum_ref, sumsq_ref, scale_ref, shift_ref,
                   *, wh, r_out, inv_m, inv_m_img):
    phase = pl.program_id(0)
    n = pl.program_id(1)

    @pl.when(jnp.logical_and(phase == 0, n == 0))
    def _init():
        sum_ref[...] = jnp.zeros_like(sum_ref)
        sumsq_ref[...] = jnp.zeros_like(sumsq_ref)

    @pl.when(phase == 0)
    def _accumulate():
        conv = _conv_image(band_ref, w_ref, wh=wh, r_out=r_out) * mask_ref[...]
        ref_mean = jnp.where(n == 0,
                             jnp.sum(conv, axis=0, keepdims=True) * inv_m_img,
                             ref_mean_ref[...])
        ref_mean_ref[...] = ref_mean
        d = (conv - ref_mean) * mask_ref[...]
        sum_ref[...] += jnp.sum(d, axis=0, keepdims=True)
        sumsq_ref[...] += jnp.sum(d * d, axis=0, keepdims=True)

    @pl.when(jnp.logical_and(phase == 1, n == 0))
    def _finalize_stats():
        dmean = sum_ref[...] * inv_m
        mean = ref_mean_ref[...] + dmean
        var = jnp.maximum(sumsq_ref[...] * inv_m - dmean * dmean, 0.0)
        scale = gamma_ref[...] * lax.rsqrt(var + EPS)
        scale_ref[...] = scale
        shift_ref[...] = beta_ref[...] - mean * scale

    @pl.when(phase == 1)
    def _normalize_store():
        conv = _conv_image(band_ref, w_ref, wh=wh, r_out=r_out)
        y = conv * scale_ref[...] + shift_ref[...]
        out_ref[0] = jnp.maximum(y, 0.0).astype(out_ref.dtype)


# ----------------------------------------------------------------------------
# Wrapper: reflect pad, space-to-depth parity layout (zero duplication), weight tap
# matrices, capacity-aware variant selection, one fused gridded pallas_call.
# ----------------------------------------------------------------------------
def bloco_cnn_forward(x_nchw, weight_oihw, gamma, beta, *,
                      out_dtype=jnp.bfloat16, force_streaming=False):
    N, Cin, H, W = x_nchw.shape
    Cout = weight_oihw.shape[0]
    assert weight_oihw.shape == (Cout, Cin, 4, 4)
    assert H % 2 == 0 and W % 2 == 0, "parity decomposition assumes even H, W"

    Ho, Wo = H // 2, W // 2
    Hh, Wh = Ho + 1, Wo + 1            # parity-subgrid spatial dims of the padded input
    K4 = 4 * Cin                        # channels after space-to-depth (di, dj, c) — no K padding
    COUT_PAD = _round_up(max(Cout, 128), 128)
    R_out = Ho * Wh                     # conv rows per image (incl. 1 discarded junk col per row)
    R_in = Hh * Wh
    R_in_pad = _round_up(R_out + Wh + 1, 16)   # last tap slice ends at R_out + Wh + 1; bf16 pack 16

    # Reflect padding=1 (padding_mode='reflect'), NCHW -> NHWC, cast to bf16 once (review item 9).
    xp = jnp.pad(x_nchw, ((0, 0), (0, 0), (1, 1), (1, 1)), mode="reflect")
    xp = jnp.transpose(xp, (0, 2, 3, 1)).astype(jnp.bfloat16)        # (N, H+2, W+2, Cin)

    # Space-to-depth parity split: x_par[n,i,j,(2di+dj)*Cin+c] = xp[n,2i+di,2j+dj,c].
    x_par = xp.reshape(N, Hh, 2, Wh, 2, Cin).transpose(0, 1, 3, 2, 4, 5)
    band = x_par.reshape(N, R_in, K4)
    band = jnp.pad(band, ((0, 0), (0, R_in_pad - R_in), (0, 0)))      # (N, R_in_pad, K4) bf16

    # Weight -> 4 tap matrices: w_taps[2a+b, (2di+dj)*Cin+c, co] = W[co, c, 2a+di, 2b+dj].
    wt = weight_oihw.astype(jnp.bfloat16).reshape(Cout, Cin, 2, 2, 2, 2)
    wt = wt.transpose(2, 4, 3, 5, 1, 0).reshape(4, K4, Cout)
    w_taps = jnp.pad(wt, ((0, 0), (0, 0), (0, COUT_PAD - Cout)))      # (4, K4, COUT_PAD) bf16

    gamma_p = jnp.pad(gamma.astype(jnp.float32).reshape(1, Cout),
                      ((0, 0), (0, COUT_PAD - Cout)))
    beta_p = jnp.pad(beta.astype(jnp.float32).reshape(1, Cout),
                     ((0, 0), (0, COUT_PAD - Cout)))

    # Valid-row mask: conv row r0 = ho*(Wo+1)+wo; the wo == Wo column is junk (discarded).
    mask = ((jnp.arange(R_out) % Wh) < Wo).astype(jnp.float32).reshape(R_out, 1)

    M = N * Ho * Wo
    inv_m = 1.0 / M

    # --- capacity-aware variant selection (v7x has 64 MiB VMEM; v5e/v6e 128 MiB) ---
    cap = _vmem_capacity_bytes()
    itemsize_out = jnp.dtype(out_dtype).itemsize
    band_buf = 2 * _round_up(R_in_pad, 16) * _round_up(max(K4, 128), 128) * 2   # dbl-buffered bf16
    out_buf = 2 * _round_up(R_out, 16) * COUT_PAD * itemsize_out
    temps = 4 * _round_up(R_out, 8) * COUT_PAD * 4                              # live f32 conv temps
    cache_bytes = N * _round_up(R_out, 8) * COUT_PAD * 4
    fixed = band_buf + out_buf + temps + (64 << 10)
    use_cache = (not force_streaming) and (fixed + cache_bytes <= int(0.55 * cap))
    need = fixed + (cache_bytes if use_cache else 0)
    vmem_limit = int(min(0.9 * cap, max(32 * 1024 * 1024, 2 * need)))

    col = lambda: pltpu.VMEM((1, COUT_PAD), jnp.float32)
    if use_cache:
        kernel = functools.partial(_kernel_cached, wh=Wh, r_out=R_out, inv_m=inv_m)
        grid = (3, N)
        band_map = lambda p, n: ((p == 0) * n, 0, 0)      # band only needed in phase 0
        out_map = lambda p, n: ((p == 2) * n, 0, 0)       # park on block 0 until the write phase
        scratch = [pltpu.VMEM((N, R_out, COUT_PAD), jnp.float32),   # conv cache
                   col(), col(), col(), col(), col()]               # sum, sumsq, mean, scale, shift
    else:
        kernel = functools.partial(_kernel_stream, wh=Wh, r_out=R_out, inv_m=inv_m,
                                   inv_m_img=1.0 / (Ho * Wo))
        grid = (2, N)
        band_map = lambda p, n: (n, 0, 0)                 # re-read per phase (recompute conv)
        out_map = lambda p, n: (p * n, 0, 0)
        scratch = [col(), col(), col(), col(), col()]     # ref_mean, sum, sumsq, scale, shift

    out_pad = pl.pallas_call(
        kernel,
        out_shape=jax.ShapeDtypeStruct((N, R_out, COUT_PAD), out_dtype),
        grid_spec=pltpu.PrefetchScalarGridSpec(
            num_scalar_prefetch=0,
            grid=grid,                                    # (phase, image)
            in_specs=[
                pl.BlockSpec((1, R_in_pad, K4), band_map),
                pl.BlockSpec((4, K4, COUT_PAD), lambda p, n: (0, 0, 0)),
                pl.BlockSpec((R_out, 1), lambda p, n: (0, 0)),
                pl.BlockSpec((1, COUT_PAD), lambda p, n: (0, 0)),
                pl.BlockSpec((1, COUT_PAD), lambda p, n: (0, 0)),
            ],
            # Non-final phases keep the output block index at 0 and never write it, so the
            # buffer is only flushed (once, with final data) when the index changes.
            out_specs=pl.BlockSpec((1, R_out, COUT_PAD), out_map),
            scratch_shapes=scratch),
        compiler_params=pltpu.CompilerParams(
            # Stats accumulate sequentially across images; phases are ordered.
            dimension_semantics=("arbitrary", "arbitrary"),
            vmem_limit_bytes=vmem_limit),
    )(band, w_taps, mask, gamma_p, beta_p)

    # Drop channel padding and the junk column, back to NCHW at the module boundary.
    # (Consumers that accept NHWC/bf16 can skip this extra pass.)
    out = out_pad[:, :, :Cout].reshape(N, Ho, Wh, Cout)[:, :, :Wo, :]
    return jnp.transpose(out, (0, 3, 1, 2))


# ----------------------------------------------------------------------------
# Pure-JAX f32 reference (correctness check).
# ----------------------------------------------------------------------------
def bloco_cnn_reference(x_nchw, weight_oihw, gamma, beta):
    xp = jnp.pad(x_nchw, ((0, 0), (0, 0), (1, 1), (1, 1)), mode="reflect")
    conv = lax.conv_general_dilated(
        xp.astype(jnp.float32), weight_oihw.astype(jnp.float32),
        window_strides=(2, 2), padding="VALID",
        dimension_numbers=("NCHW", "OIHW", "NCHW"))
    mean = conv.mean(axis=(0, 2, 3), keepdims=True)
    var = conv.var(axis=(0, 2, 3), keepdims=True)  # biased, as in PyTorch normalization
    g = gamma.reshape(1, -1, 1, 1)
    b = beta.reshape(1, -1, 1, 1)
    y = (conv - mean) * lax.rsqrt(var + EPS) * g + b
    return jnp.maximum(y, 0.0)


if __name__ == "__main__":
    # Small shapes consistent with the module: batch=2, Cin=4, Cout=8, spatial=16.
    N, Cin, Cout, H, W = 2, 4, 8, 16, 16

    key = jax.random.PRNGKey(0)
    kx, kw, kg, kb = jax.random.split(key, 4)
    x = jax.random.normal(kx, (N, Cin, H, W), dtype=jnp.float32)
    # Conv2d weight (Cout, Cin, 4, 4), Kaiming-uniform-like scale, bias=False.
    fan_in = Cin * 4 * 4
    bound = 1.0 / (fan_in ** 0.5)
    weight = jax.random.uniform(kw, (Cout, Cin, 4, 4), jnp.float32, -bound, bound)
    # BatchNorm2d affine params (exercise the scale/shift path).
    gamma = 1.0 + 0.1 * jax.random.normal(kg, (Cout,), dtype=jnp.float32)
    beta = 0.1 * jax.random.normal(kb, (Cout,), dtype=jnp.float32)

    ref = jax.block_until_ready(bloco_cnn_reference(x, weight, gamma, beta))

    # Primary path (conv cached in VMEM, exact two-pass BatchNorm stats).
    out = jax.block_until_ready(bloco_cnn_forward(x, weight, gamma, beta))
    assert out.shape == (N, Cout, H // 2, W // 2), out.shape
    assert jnp.allclose(out.astype(jnp.float32), ref, atol=5e-2, rtol=5e-2), \
        float(jnp.max(jnp.abs(out.astype(jnp.float32) - ref)))

    # Streaming fallback path (recompute conv, shifted-sum variance).
    out_s = jax.block_until_ready(
        bloco_cnn_forward(x, weight, gamma, beta, force_streaming=True))
    assert out_s.shape == (N, Cout, H // 2, W // 2), out_s.shape
    assert jnp.allclose(out_s.astype(jnp.float32), ref, atol=5e-2, rtol=5e-2), \
        float(jnp.max(jnp.abs(out_s.astype(jnp.float32) - ref)))

    print("KERNEL_OK")
</pallas_src>

<mosaic_0001>
module attributes {stable_mosaic.version = 11 : i64} {
  func.func @_kernel_cached(%arg0: i32, %arg1: i32, %arg2: memref<1x96x16xbf16, #tpu.memory_space<vmem>>, %arg3: memref<4x16x128xbf16, #tpu.memory_space<vmem>>, %arg4: memref<72x1xf32, #tpu.memory_space<vmem>>, %arg5: memref<1x128xf32, #tpu.memory_space<vmem>>, %arg6: memref<1x128xf32, #tpu.memory_space<vmem>>, %arg7: memref<1x72x128xbf16, #tpu.memory_space<vmem>>, %arg8: memref<2x72x128xf32, #tpu.memory_space<vmem>>, %arg9: memref<1x128xf32, #tpu.memory_space<vmem>>, %arg10: memref<1x128xf32, #tpu.memory_space<vmem>>, %arg11: memref<1x128xf32, #tpu.memory_space<vmem>>, %arg12: memref<1x128xf32, #tpu.memory_space<vmem>>, %arg13: memref<1x128xf32, #tpu.memory_space<vmem>>) attributes {dimension_semantics = [#tpu.dimension_semantics<arbitrary>, #tpu.dimension_semantics<arbitrary>], iteration_bounds = array<i64: 3, 2>, scalar_prefetch = 0 : i64, scratch_operands = 6 : i64, tpu.core_type = #tpu.core_type<tc>, window_params = [{transform_indices = @transform_0, window_bounds = array<i64: 1, 96, 16>}, {pipeline_mode = #tpu.pipeline_mode<synchronous>, transform_indices = @transform_1, window_bounds = array<i64: 4, 16, 128>}, {pipeline_mode = #tpu.pipeline_mode<synchronous>, transform_indices = @transform_2, window_bounds = array<i64: 72, 1>}, {pipeline_mode = #tpu.pipeline_mode<synchronous>, transform_indices = @transform_3, window_bounds = array<i64: 1, 128>}, {pipeline_mode = #tpu.pipeline_mode<synchronous>, transform_indices = @transform_4, window_bounds = array<i64: 1, 128>}, {transform_indices = @transform_5, window_bounds = array<i64: 1, 72, 128>}]} {
    %c0_i32 = arith.constant 0 : i32
    %0 = arith.cmpi eq, %arg0, %c0_i32 : i32
    %c0_i32_0 = arith.constant 0 : i32
    %1 = arith.cmpi eq, %arg1, %c0_i32_0 : i32
    %2 = arith.andi %0, %1 : i1
    %3 = arith.extui %2 : i1 to i32
    %c0_i32_1 = arith.constant 0 : i32
    %4 = arith.cmpi ne, %3, %c0_i32_1 : i32
    scf.if %4 {
      %cst = arith.constant 0.000000e+00 : f32
      %24 = vector.broadcast %cst : f32 to vector<1x128xf32>
      %c0 = arith.constant 0 : index
      %c0_12 = arith.constant 0 : index
      %25 = vector.load %arg9[%c0, %c0_12] : memref<1x128xf32, #tpu.memory_space<vmem>>, vector<1x128xf32>
      tpu.vector_store %arg9[%c0, %c0_12], %24 {strides = array<i32>} : memref<1x128xf32, #tpu.memory_space<vmem>>, vector<1x128xf32>,
    } else {
    }
    %c0_i32_2 = arith.constant 0 : i32
    %5 = arith.cmpi eq, %arg0, %c0_i32_2 : i32
    %6 = arith.extui %5 : i1 to i32
    %c0_i32_3 = arith.constant 0 : i32
    %7 = arith.cmpi ne, %6, %c0_i32_3 : i32
    scf.if %7 {
      %c0 = arith.constant 0 : index
      %c0_12 = arith.constant 0 : index
      %c0_13 = arith.constant 0 : index
      %24 = vector.load %arg2[%c0, %c0_12, %c0_13] : memref<1x96x16xbf16, #tpu.memory_space<vmem>>, vector<1x72x16xbf16>
      %25 = vector.shape_cast %24 : vector<1x72x16xbf16> to vector<72x16xbf16>
      %c0_14 = arith.constant 0 : index
      %c0_15 = arith.constant 0 : index
      %c0_16 = arith.constant 0 : index
      %26 = vector.load %arg3[%c0_14, %c0_15, %c0_16] : memref<4x16x128xbf16, #tpu.memory_space<vmem>>, vector<1x16x128xbf16>
      %27 = vector.shape_cast %26 : vector<1x16x128xbf16> to vector<16x128xbf16>
      %cst = arith.constant dense<0.000000e+00> : vector<72x128xf32>
      %28 = tpu.matmul %25, %27, %cst {dimension_numbers = #tpu.dot_dimension_numbers<[1], [0], [0], [1], [0, 0, 1, 1], [], []>} : vector<72x16xbf16>, vector<16x128xbf16>, vector<72x128xf32> -> vector<72x128xf32>
      %c0_17 = arith.constant 0 : index
      %c1 = arith.constant 1 : index
      %c0_18 = arith.constant 0 : index
      %29 = vector.load %arg2[%c0_17, %c1, %c0_18] : memref<1x96x16xbf16, #tpu.memory_space<vmem>>, vector<1x72x16xbf16>
      %30 = vector.shape_cast %29 : vector<1x72x16xbf16> to vector<72x16xbf16>
      %c1_19 = arith.constant 1 : index
      %c0_20 = arith.constant 0 : index
      %c0_21 = arith.constant 0 : index
      %31 = vector.load %arg3[%c1_19, %c0_20, %c0_21] : memref<4x16x128xbf16, #tpu.memory_space<vmem>>, vector<1x16x128xbf16>
      %32 = vector.shape_cast %31 : vector<1x16x128xbf16> to vector<16x128xbf16>
      %cst_22 = arith.constant dense<0.000000e+00> : vector<72x128xf32>
      %33 = tpu.matmul %30, %32, %cst_22 {dimension_numbers = #tpu.dot_dimension_numbers<[1], [0], [0], [1], [0, 0, 1, 1], [], []>} : vector<72x16xbf16>, vector<16x128xbf16>, vector<72x128xf32> -> vector<72x128xf32>
      %34 = arith.addf %28, %33 : vector<72x128xf32>
      %c0_23 = arith.constant 0 : index
      %c9 = arith.constant 9 : index
      %c0_24 = arith.constant 0 : index
      %35 = vector.load %arg2[%c0_23, %c9, %c0_24] : memref<1x96x16xbf16, #tpu.memory_space<vmem>>, vector<1x72x16xbf16>
      %36 = vector.shape_cast %35 : vector<1x72x16xbf16> to vector<72x16xbf16>
      %c2 = arith.constant 2 : index
      %c0_25 = arith.constant 0 : index
      %c0_26 = arith.constant 0 : index
      %37 = vector.load %arg3[%c2, %c0_25, %c0_26] : memref<4x16x128xbf16, #tpu.memory_space<vmem>>, vector<1x16x128xbf16>
      %38 = vector.shape_cast %37 : vector<1x16x128xbf16> to vector<16x128xbf16>
      %cst_27 = arith.constant dense<0.000000e+00> : vector<72x128xf32>
      %39 = tpu.matmul %36, %38, %cst_27 {dimension_numbers = #tpu.dot_dimension_numbers<[1], [0], [0], [1], [0, 0, 1, 1], [], []>} : vector<72x16xbf16>, vector<16x128xbf16>, vector<72x128xf32> -> vector<72x128xf32>
      %40 = arith.addf %34, %39 : vector<72x128xf32>
      %c0_28 = arith.constant 0 : index
      %c10 = arith.constant 10 : index
      %c0_29 = arith.constant 0 : index
      %41 = vector.load %arg2[%c0_28, %c10, %c0_29] : memref<1x96x16xbf16, #tpu.memory_space<vmem>>, vector<1x72x16xbf16>
      %42 = vector.shape_cast %41 : vector<1x72x16xbf16> to vector<72x16xbf16>
      %c3 = arith.constant 3 : index
      %c0_30 = arith.constant 0 : index
      %c0_31 = arith.constant 0 : index
      %43 = vector.load %arg3[%c3, %c0_30, %c0_31] : memref<4x16x128xbf16, #tpu.memory_space<vmem>>, vector<1x16x128xbf16>
      %44 = vector.shape_cast %43 : vector<1x16x128xbf16> to vector<16x128xbf16>
      %cst_32 = arith.constant dense<0.000000e+00> : vector<72x128xf32>
      %45 = tpu.matmul %42, %44, %cst_32 {dimension_numbers = #tpu.dot_dimension_numbers<[1], [0], [0], [1], [0, 0, 1, 1], [], []>} : vector<72x16xbf16>, vector<16x128xbf16>, vector<72x128xf32> -> vector<72x128xf32>
      %46 = arith.addf %40, %45 : vector<72x128xf32>
      %c0_33 = arith.constant 0 : index
      %c0_34 = arith.constant 0 : index
      %47 = vector.load %arg4[%c0_33, %c0_34] : memref<72x1xf32, #tpu.memory_space<vmem>>, vector<72x1xf32>
      %48 = vector.broadcast %47 : vector<72x1xf32> to vector<72x128xf32>
      %49 = arith.mulf %46, %48 : vector<72x128xf32>
      %50 = arith.index_cast %arg1 : i32 to index
      %c0_35 = arith.constant 0 : index
      %c0_36 = arith.constant 0 : index
      %51 = vector.load %arg8[%50, %c0_35, %c0_36] : memref<2x72x128xf32, #tpu.memory_space<vmem>>, vector<1x72x128xf32>
      %52 = vector.shape_cast %51 : vector<1x72x128xf32> to vector<72x128xf32>
      %53 = vector.shape_cast %49 : vector<72x128xf32> to vector<1x72x128xf32>
      tpu.vector_store %arg8[%50, %c0_35, %c0_36], %53 {strides = array<i32>} : memref<2x72x128xf32, #tpu.memory_space<vmem>>, vector<1x72x128xf32>,
      %c0_37 = arith.constant 0 : index
      %c0_38 = arith.constant 0 : index
      %54 = vector.load %arg9[%c0_37, %c0_38] : memref<1x128xf32, #tpu.memory_space<vmem>>, vector<1x128xf32>
      %cst_39 = arith.constant dense<0.000000e+00> : vector<128xf32>
      %55 = vector.multi_reduction <add>, %49, %cst_39 [0] : vector<72x128xf32> to vector<128xf32>
      %56 = vector.shape_cast %55 : vector<128xf32> to vector<1x128xf32>
      %57 = arith.addf %54, %56 : vector<1x128xf32>
      %c0_40 = arith.constant 0 : index
      %c0_41 = arith.constant 0 : index
      %58 = vector.load %arg9[%c0_40, %c0_41] : memref<1x128xf32, #tpu.memory_space<vmem>>, vector<1x128xf32>
      tpu.vector_store %arg9[%c0_40, %c0_41], %57 {strides = array<i32>} : memref<1x128xf32, #tpu.memory_space<vmem>>, vector<1x128xf32>,
    } else {
    }
    %c1_i32 = arith.constant 1 : i32
    %8 = arith.cmpi eq, %arg0, %c1_i32 : i32
    %c0_i32_4 = arith.constant 0 : i32
    %9 = arith.cmpi eq, %arg1, %c0_i32_4 : i32
    %10 = arith.andi %8, %9 : i1
    %11 = arith.extui %10 : i1 to i32
    %c0_i32_5 = arith.constant 0 : i32
    %12 = arith.cmpi ne, %11, %c0_i32_5 : i32
    scf.if %12 {
      %c0 = arith.constant 0 : index
      %c0_12 = arith.constant 0 : index
      %24 = vector.load %arg9[%c0, %c0_12] : memref<1x128xf32, #tpu.memory_space<vmem>>, vector<1x128xf32>
      %cst = arith.constant 7.812500e-03 : f32
      %25 = vector.broadcast %cst : f32 to vector<1x128xf32>
      %26 = arith.mulf %24, %25 : vector<1x128xf32>
      %c0_13 = arith.constant 0 : index
      %c0_14 = arith.constant 0 : index
      %27 = vector.load %arg11[%c0_13, %c0_14] : memref<1x128xf32, #tpu.memory_space<vmem>>, vector<1x128xf32>
      tpu.vector_store %arg11[%c0_13, %c0_14], %26 {strides = array<i32>} : memref<1x128xf32, #tpu.memory_space<vmem>>, vector<1x128xf32>,
      %cst_15 = arith.constant 0.000000e+00 : f32
      %28 = vector.broadcast %cst_15 : f32 to vector<1x128xf32>
      %c0_16 = arith.constant 0 : index
      %c0_17 = arith.constant 0 : index
      %29 = vector.load %arg10[%c0_16, %c0_17] : memref<1x128xf32, #tpu.memory_space<vmem>>, vector<1x128xf32>
      tpu.vector_store %arg10[%c0_16, %c0_17], %28 {strides = array<i32>} : memref<1x128xf32, #tpu.memory_space<vmem>>, vector<1x128xf32>,
    } else {
    }
    %c1_i32_6 = arith.constant 1 : i32
    %13 = arith.cmpi eq, %arg0, %c1_i32_6 : i32
    %14 = arith.extui %13 : i1 to i32
    %c0_i32_7 = arith.constant 0 : i32
    %15 = arith.cmpi ne, %14, %c0_i32_7 : i32
    scf.if %15 {
      %24 = arith.index_cast %arg1 : i32 to index
      %c0 = arith.constant 0 : index
      %c0_12 = arith.constant 0 : index
      %25 = vector.load %arg8[%24, %c0, %c0_12] : memref<2x72x128xf32, #tpu.memory_space<vmem>>, vector<1x72x128xf32>
      %26 = vector.shape_cast %25 : vector<1x72x128xf32> to vector<72x128xf32>
      %c0_13 = arith.constant 0 : index
      %c0_14 = arith.constant 0 : index
      %27 = vector.load %arg11[%c0_13, %c0_14] : memref<1x128xf32, #tpu.memory_space<vmem>>, vector<1x128xf32>
      %28 = vector.broadcast %27 : vector<1x128xf32> to vector<72x128xf32>
      %29 = arith.subf %26, %28 : vector<72x128xf32>
      %c0_15 = arith.constant 0 : index
      %c0_16 = arith.constant 0 : index
      %30 = vector.load %arg4[%c0_15, %c0_16] : memref<72x1xf32, #tpu.memory_space<vmem>>, vector<72x1xf32>
      %31 = vector.broadcast %30 : vector<72x1xf32> to vector<72x128xf32>
      %32 = arith.mulf %29, %31 : vector<72x128xf32>
      %c0_17 = arith.constant 0 : index
      %c0_18 = arith.constant 0 : index
      %33 = vector.load %arg10[%c0_17, %c0_18] : memref<1x128xf32, #tpu.memory_space<vmem>>, vector<1x128xf32>
      %34 = arith.mulf %32, %32 : vector<72x128xf32>
      %cst = arith.constant dense<0.000000e+00> : vector<128xf32>
      %35 = vector.multi_reduction <add>, %34, %cst [0] : vector<72x128xf32> to vector<128xf32>
      %36 = vector.shape_cast %35 : vector<128xf32> to vector<1x128xf32>
      %37 = arith.addf %33, %36 : vector<1x128xf32>
      %c0_19 = arith.constant 0 : index
      %c0_20 = arith.constant 0 : index
      %38 = vector.load %arg10[%c0_19, %c0_20] : memref<1x128xf32, #tpu.memory_space<vmem>>, vector<1x128xf32>
      tpu.vector_store %arg10[%c0_19, %c0_20], %37 {strides = array<i32>} : memref<1x128xf32, #tpu.memory_space<vmem>>, vector<1x128xf32>,
    } else {
    }
    %c2_i32 = arith.constant 2 : i32
    %16 = arith.cmpi eq, %arg0, %c2_i32 : i32
    %c0_i32_8 = arith.constant 0 : i32
    %17 = arith.cmpi eq, %arg1, %c0_i32_8 : i32
    %18 = arith.andi %16, %17 : i1
    %19 = arith.extui %18 : i1 to i32
    %c0_i32_9 = arith.constant 0 : i32
    %20 = arith.cmpi ne, %19, %c0_i32_9 : i32
    scf.if %20 {
      %c0 = arith.constant 0 : index
      %c0_12 = arith.constant 0 : index
      %24 = vector.load %arg10[%c0, %c0_12] : memref<1x128xf32, #tpu.memory_space<vmem>>, vector<1x128xf32>
      %cst = arith.constant 7.812500e-03 : f32
      %25 = vector.broadcast %cst : f32 to vector<1x128xf32>
      %26 = arith.mulf %24, %25 : vector<1x128xf32>
      %cst_13 = arith.constant 0.000000e+00 : f32
      %27 = vector.broadcast %cst_13 : f32 to vector<1x128xf32>
      %28 = arith.maximumf %26, %27 : vector<1x128xf32>
      %c0_14 = arith.constant 0 : index
      %c0_15 = arith.constant 0 : index
      %29 = vector.load %arg5[%c0_14, %c0_15] : memref<1x128xf32, #tpu.memory_space<vmem>>, vector<1x128xf32>
      %cst_16 = arith.constant 9.99999974E-6 : f32
      %30 = vector.broadcast %cst_16 : f32 to vector<1x128xf32>
      %31 = arith.addf %28, %30 : vector<1x128xf32>
      %32 = math.rsqrt %31 : vector<1x128xf32>
      %33 = arith.mulf %29, %32 : vector<1x128xf32>
      %c0_17 = arith.constant 0 : index
      %c0_18 = arith.constant 0 : index
      %34 = vector.load %arg12[%c0_17, %c0_18] : memref<1x128xf32, #tpu.memory_space<vmem>>, vector<1x128xf32>
      tpu.vector_store %arg12[%c0_17, %c0_18], %33 {strides = array<i32>} : memref<1x128xf32, #tpu.memory_space<vmem>>, vector<1x128xf32>,
      %c0_19 = arith.constant 0 : index
      %c0_20 = arith.constant 0 : index
      %35 = vector.load %arg6[%c0_19, %c0_20] : memref<1x128xf32, #tpu.memory_space<vmem>>, vector<1x128xf32>
      %c0_21 = arith.constant 0 : index
      %c0_22 = arith.constant 0 : index
      %36 = vector.load %arg11[%c0_21, %c0_22] : memref<1x128xf32, #tpu.memory_space<vmem>>, vector<1x128xf32>
      %37 = arith.mulf %36, %33 : vector<1x128xf32>
      %38 = arith.subf %35, %37 : vector<1x128xf32>
      %c0_23 = arith.constant 0 : index
      %c0_24 = arith.constant 0 : index
      %39 = vector.load %arg13[%c0_23, %c0_24] : memref<1x128xf32, #tpu.memory_space<vmem>>, vector<1x128xf32>
      tpu.vector_store %arg13[%c0_23, %c0_24], %38 {strides = array<i32>} : memref<1x128xf32, #tpu.memory_space<vmem>>, vector<1x128xf32>,
    } else {
    }
    %c2_i32_10 = arith.constant 2 : i32
    %21 = arith.cmpi eq, %arg0, %c2_i32_10 : i32
    %22 = arith.extui %21 : i1 to i32
    %c0_i32_11 = arith.constant 0 : i32
    %23 = arith.cmpi ne, %22, %c0_i32_11 : i32
    scf.if %23 {
      %24 = arith.index_cast %arg1 : i32 to index
      %c0 = arith.constant 0 : index
      %c0_12 = arith.constant 0 : index
      %25 = vector.load %arg8[%24, %c0, %c0_12] : memref<2x72x128xf32, #tpu.memory_space<vmem>>, vector<1x72x128xf32>
      %26 = vector.shape_cast %25 : vector<1x72x128xf32> to vector<72x128xf32>
      %c0_13 = arith.constant 0 : index
      %c0_14 = arith.constant 0 : index
      %27 = vector.load %arg12[%c0_13, %c0_14] : memref<1x128xf32, #tpu.memory_space<vmem>>, vector<1x128xf32>
      %28 = vector.broadcast %27 : vector<1x128xf32> to vector<72x128xf32>
      %29 = arith.mulf %26, %28 : vector<72x128xf32>
      %c0_15 = arith.constant 0 : index
      %c0_16 = arith.constant 0 : index
      %30 = vector.load %arg13[%c0_15, %c0_16] : memref<1x128xf32, #tpu.memory_space<vmem>>, vector<1x128xf32>
      %31 = vector.broadcast %30 : vector<1x128xf32> to vector<72x128xf32>
      %32 = arith.addf %29, %31 : vector<72x128xf32>
      %cst = arith.constant 0.000000e+00 : f32
      %33 = vector.broadcast %cst : f32 to vector<72x128xf32>
      %34 = arith.maximumf %32, %33 : vector<72x128xf32>
      %35 = arith.truncf %34 : vector<72x128xf32> to vector<72x128xbf16>
      %c0_17 = arith.constant 0 : index
      %c0_18 = arith.constant 0 : index
      %c0_19 = arith.constant 0 : index
      %36 = vector.load %arg7[%c0_17, %c0_18, %c0_19] : memref<1x72x128xbf16, #tpu.memory_space<vmem>>, vector<1x72x128xbf16>
      %37 = vector.shape_cast %36 : vector<1x72x128xbf16> to vector<72x128xbf16>
      %38 = vector.shape_cast %35 : vector<72x128xbf16> to vector<1x72x128xbf16>
      tpu.vector_store %arg7[%c0_17, %c0_18, %c0_19], %38 {strides = array<i32>} : memref<1x72x128xbf16, #tpu.memory_space<vmem>>, vector<1x72x128xbf16>,
    } else {
    }
    return
  }
  func.func @transform_0(%arg0: i32, %arg1: i32) -> (i32, i32, i32) {
    %c0_i32 = arith.constant 0 : i32
    %0 = arith.cmpi eq, %arg0, %c0_i32 : i32
    %1 = arith.extui %0 : i1 to i32
    %2 = arith.muli %1, %arg1 : i32
    %c0_i32_0 = arith.constant 0 : i32
    %c0_i32_1 = arith.constant 0 : i32
    %c0_i32_2 = arith.constant 0 : i32
    return %2, %c0_i32_0, %c0_i32_1 : i32, i32, i32
  }
  func.func @transform_1(%arg0: i32, %arg1: i32) -> (i32, i32, i32) {
    %c0_i32 = arith.constant 0 : i32
    %c0_i32_0 = arith.constant 0 : i32
    %c0_i32_1 = arith.constant 0 : i32
    %c0_i32_2 = arith.constant 0 : i32
    return %c0_i32, %c0_i32_0, %c0_i32_1 : i32, i32, i32
  }
  func.func @transform_2(%arg0: i32, %arg1: i32) -> (i32, i32) {
    %c0_i32 = arith.constant 0 : i32
    %c0_i32_0 = arith.constant 0 : i32
    %c0_i32_1 = arith.constant 0 : i32
    return %c0_i32, %c0_i32_0 : i32, i32
  }
  func.func @transform_3(%arg0: i32, %arg1: i32) -> (i32, i32) {
    %c0_i32 = arith.constant 0 : i32
    %c0_i32_0 = arith.constant 0 : i32
    %c0_i32_1 = arith.constant 0 : i32
    return %c0_i32, %c0_i32_0 : i32, i32
  }
  func.func @transform_4(%arg0: i32, %arg1: i32) -> (i32, i32) {
    %c0_i32 = arith.constant 0 : i32
    %c0_i32_0 = arith.constant 0 : i32
    %c0_i32_1 = arith.constant 0 : i32
    return %c0_i32, %c0_i32_0 : i32, i32
  }
  func.func @transform_5(%arg0: i32, %arg1: i32) -> (i32, i32, i32) {
    %c2_i32 = arith.constant 2 : i32
    %0 = arith.cmpi eq, %arg0, %c2_i32 : i32
    %1 = arith.extui %0 : i1 to i32
    %2 = arith.muli %1, %arg1 : i32
    %c0_i32 = arith.constant 0 : i32
    %c0_i32_0 = arith.constant 0 : i32
    %c0_i32_1 = arith.constant 0 : i32
    return %2, %c0_i32, %c0_i32_0 : i32, i32, i32
  }
}

</mosaic_0001>

<bundles_post_ra>
// kernel: tpu_custom_call.1
= control target key start
LH: loop header
LB: loop body
LE: loop exit
PB: predicated region body
PF: predicated region fallthrough
CT: control target
= control target key end

     0   :  { %10 = vsyncpa [#allocation9], 0  ;;  %s2172_s0 = inlined_call_operand.vmem [shape: bf16[2,96,16], index: 0, kind: input, shape index: {}]   ;;  %s2173_s1 = inlined_call_operand.vmem [shape: bf16[4,16,128], index: 1, kind: input, shape index: {}]   ;;  %s2174_s2 = inlined_call_operand.vmem [shape: f32[72,1], index: 2, kind: input, shape index: {}]   ;;  %s2175_s3 = inlined_call_operand.vmem [shape: f32[1,128], index: 3, kind: input, shape index: {}]   ;;  %s2176_s4 = inlined_call_operand.vmem [shape: f32[1,128], index: 4, kind: input, shape index: {}]   ;;  %s2177_s5 = inlined_call_operand.hbm [shape: bf16[2,72,128], index: 5, kind: output, shape index: {}]  }
   0x1   :  { %12 = vsyncpa [#allocation9 + $0x1], 0  ;;  %s1770_s18 = smov 0   ;;  %s1772_s19 = smov 0  }
   0x2   :  { %s1774_s20 = smov 0   ;;  %s1776_s21 = smov 0  }
   0x3   :  { %s1778_s22 = smov 0   ;;  %s1780_s23 = smov 0  }
   0x4   :  { %s1782_s24 = smov 0   ;;  %s1784_s25 = smov 0  }
   0x5 LB: > { %s1272_s26 = sadd.s32 4294967295, %s1729_s25   ;;  %s27_s27 = sadd.s32 1, %s1721_s23  ;;  %s1729_s25 = sphi %s1784_s25, %s18_s25   ;;  %s1725_s24 = sphi %s1782_s24, %s2186_s24   ;;  %s1721_s23 = sphi %s1780_s23, %s2185_s23   ;;  %s1717_s22 = sphi %s1778_s22, %s2184_s22   ;;  %s1713_s21 = sphi %s1776_s21, %s2183_s21   ;;  %s1709_s20 = sphi %s1774_s20, %s2182_s20   ;;  %s1705_s19 = sphi %s1772_s19, %s2181_s19   ;;  %s1701_s18 = sphi %s1770_s18, %s2180_s18  }
   0x6   : > { %s30_s28 = sadd.s32 1, %s1725_s24  ;;  %p28_p0 = scmp.ge.s32.totalorder %s27_s27, 2 }
   0x7   : > { %p150_p1 = scmp.eq.s32.totalorder %s1725_s24, 2  ;;  %s1273_s29 = sadd.s32 4294967294, %s1729_s25  }
   0x8   : > { %p169_p2 = scmp.ne.s32.totalorder %s1709_s20, %s1705_s19  ;;  %s2188_s27 = smov (%p28_p0, %s27_s27), 0 }
   0x9   : > { %s2190_s28 = smov (!%p28_p0, %s30_s28), %s1725_s24  ;;  %p170_p4 = scmp.eq.s32.totalorder %s1272_s26, 5 }
   0xa   : > { %s151_s30 = scalar_select %p150_p1, 1, 0 }
   0xb   : > { %p32_p3 = scmp.ge.s32.totalorder %s2190_s28, 3  ;;  %p175_p5 = scmp.ne.s32.totalorder %s1705_s19, %s1701_s18 }
   0xc   : > { %s152_s6 = smul.u32 %s1721_s23, %s151_s30  ;;  %p1825_p6 = por %p170_p4, %p169_p2 }
   0xd   : > { %s2192_s28 = smov (%p32_p3, %s2190_s28), 0  ;;  %p176_p7 = scmp.eq.s32.totalorder %s1273_s29, 5 }
   0xe   : > { %p153_p8 = scmp.eq.s32.totalorder %s2192_s28, 2  ;;  %p1276_p9 = scmp.ge.s32.totalorder %s1729_s25, 1 }
   0xf   : > { %p1831_p10 = por %p176_p7, %p175_p5  ;;  %p220_p11 = scmp.lt.s32.totalorder %s1729_s25, 7 }
  0x10   : > { %s154_s9 = scalar_select %p153_p8, 1, 0 }
  0x11   : > { %p221_p12 = pnand %p1276_p9, %p220_p11  ;;  %s159_s12 = sadd.s32 1, %s1709_s20 }
  0x12   : > { %s155_s10 = smul.u32 %s154_s9, %s2188_s27  ;;  %s248_s14 = sand.u32 (!%p221_p12), 1, %s1705_s19  }
  0x13   : > { %224 = sbr.rel (%p221_p12) target bundleno = 615 (0x267), region = 40  ;;  %p251_p0 = scmp.eq.s32.totalorder (!%p221_p12), %s1717_s22, 0 }
  0x14   : > { %s156_s11 = ssub.s32 %s152_s6, %s155_s10  ;;  %s1531_s15 = smul.u32 (!%p221_p12), 36, %s248_s14 }
  0x15   : > { %p157_p13 = scmp.eq.s32.totalorder %s156_s11, 0  ;;  %p267_p1 = scmp.eq.s32.totalorder (!%p221_p12), %s1713_s21, 0 }
  0x16   : > { %s1854_s9 = scalar_lea.vmem (!%p221_p12), [#allocation8], %s1531_s15 }
  0x17   : > { %s1839_s13 = scalar_select %p157_p13, %s1709_s20, %s159_s12  }
  0x18   : > { %p268_p2 = pnand (!%p221_p12), %p267_p1, %p251_p0 }
  0x1a   : > { %s252_s16 = scalar_select %p251_p0, 1, 0 }
  0x1b   : > { %v1731_v0 = vmov (!%p268_p2), 0.0  }
  0x1c   : > { %s253_s17 = smul.u32 %s1713_s21, %s252_s16  ;;  %272 = vst [vmem:[#allocation3] sm:$0x1] (!%p268_p2), %v1731_v0 }
  0x1d   : > { %271 = sbr.rel (%p268_p2) target bundleno = 36 (0x24), region = 44 }
  0x1e   : > { %p254_p3 = scmp.lt.s32.totalorder %s253_s17, 1 }
  0x20   : > { %s2194_s17 = smov (!%p254_p3, %s253_s17), 1 }
  0x21   : > { %s1532_s26 = smul.u32 48, %s2194_s17 }
  0x23   : > { %s1852_s6 = scalar_lea.vmem %s2172_s0, %s1532_s26 }
  0x24 PF: > { %p1278_p4 = scmp.ne.s32.totalorder %s1717_s22, 0 }
  0x25   : > { %v1615_v1 = vld [vmem:[%s2173_s1 + $0x8] sm:$0xff] (!%p1278_p4)   ;;  %v1732_v2 = vmov (!%p1278_p4), 0.0   ;;  %v1616_v3 = vld [vmem:[%s2173_s1 + $0x10] sm:$0xff] (!%p1278_p4)   ;;  %vm1733_vm0 = vmmov (!%p1278_p4), 0   ;;  %v1869_v4 = vld [vmem:[%s1852_s6] sm:$0xff] (!%p1278_p4)   ;;  %vm362_vm2 = vcmask (!%p1278_p4), 130048  }
  0x26   : > { %275 = sbr.rel (%p1278_p4) target bundleno = 354 (0x162), region = 48  ;;  %1394 = vmatprep.subr.bf16.mxu1 (!%p1278_p4), %v1732_v2  ;;  %1438 = vmatprep.subr.bf16.mxu0 (!%p1278_p4), %v1732_v2  ;;  %v1872_v5 = vld [vmem:[%s1852_s6 + $0x8] sm:$0xff] (!%p1278_p4)   ;;  %vm316_vm1 = vsmask.f32 (!%p1278_p4), 7424  ;;  %v318_v6 = vshrl.u32 (!%p1278_p4), %v1869_v4, 16  ;;  %v320_v7 = vshll.u32 (!%p1278_p4), %v1869_v4, 16 }
  0x27   : > { %1395 = vmatpush3.bf16.msra.mxu1 (!%p1278_p4), %v1615_v1  ;;  %1396 = vmatprep.mubr.msk.bf16.mxu1 (!%p1278_p4), %vm1733_vm0, %v1732_v2  ;;  %v325_v8 = vshll.u32 (!%p1278_p4), %v1872_v5, 16  ;;  %v540_v9 = vld [vmem:[%s1852_s6 + $0x4] sm:$0xf] (!%p1278_p4)  ;;  %v1882_v10 = vld [vmem:[%s1852_s6 + $0xc] sm:$0xff] (!%p1278_p4)   ;;  %v1885_v11 = vld [vmem:[%s1852_s6 + $0x8] sm:$0xf] (!%p1278_p4) }
  0x28   : > { %1439 = vmatpush3.bf16.msra.mxu0 (!%p1278_p4), %v1616_v3  ;;  %1416 = vmatprep.subr.bf16.mxu1 (!%p1278_p4), %v1732_v2  ;;  %v322_v12 = vrot.slane (!%p1278_p4), %v320_v7, 1  ;;  %v1301_v14 = vcombine.low (!%p1278_p4), %v540_v9, %v1885_v11  ;;  %v586_v15 = vshll.u32 (!%p1278_p4), %v1882_v10, 16  ;;  %v1619_v17 = vld [vmem:[%s2173_s1] sm:$0xff] (!%p1278_p4)   ;;  %v1893_v20 = vld [vmem:[%s1852_s6 + $0x10] sm:$0xff] (!%p1278_p4)   ;;  %v329_v22 = vshrl.u32 (!%p1278_p4), %v1872_v5, 16  ;;  %v1622_v29 = vld [vmem:[%s2173_s1 + $0x18] sm:$0xff] (!%p1278_p4)  }
  0x29   : > { %1440 = vmatprep.mubr.msk.bf16.mxu0 (!%p1278_p4), %vm1733_vm0, %v1732_v2  ;;  %1460 = vmatprep.subr.bf16.mxu0 (!%p1278_p4), %v1732_v2  ;;  %v327_v13 = vrot.slane (!%p1278_p4), %v325_v8, 1  ;;  %v1897_v23 = vld [vmem:[%s1852_s6 + $0x14] sm:$0xff] (!%p1278_p4)   ;;  %v333_v26 = vshll.u32 (!%p1278_p4), %v1893_v20, 16  ;;  %v590_v27 = vshrl.u32 (!%p1278_p4), %v1882_v10, 16  ;;  %v337_v35 = vshrl.u32 (!%p1278_p4), %v1893_v20, 16  ;;  %v1920_v40 = vld [vmem:[%s1852_s6 + $0x1c] sm:$0xff] (!%p1278_p4)  }
  0x2a   : > { %v323_v16 = vor.u32 (!%p1278_p4), %v322_v12, %v318_v6  ;;  %v579_v18 = vshrl.u32 (!%p1278_p4), %v1301_v14, 16  ;;  %v581_v19 = vshll.u32 (!%p1278_p4), %v1301_v14, 16  ;;  %v588_v21 = vrot.slane (!%p1278_p4), %v586_v15, 1  ;;  %v1910_v33 = vld [vmem:[%s1852_s6 + $0x18] sm:$0xff] (!%p1278_p4)   ;;  %v1923_v41 = vld [vmem:[%s1852_s6 + $0x20] sm:$0xf] (!%p1278_p4) }
  0x2b   : > { %v331_v30 = vor.u32 (!%p1278_p4), %v329_v22, %v327_v13  ;;  %v335_v31 = vrot.slane (!%p1278_p4), %v333_v26, 1  ;;  %v594_v32 = vshll.u32 (!%p1278_p4), %v1897_v23, 16  ;;  %v341_v39 = vshll.u32 (!%p1278_p4), %v1910_v33, 16  ;;  %v287_v42 = vld [vmem:[%s1852_s6 + $0x24] sm:$0x1] (!%p1278_p4)  ;;  %v840_v52 = vld [vmem:[%s2174_s2 + $0x10] sm:$0xff] (!%p1278_p4) }
  0x2c   : > { %v328_v24 = vsel (!%p1278_p4), %vm316_vm1, %v323_v16, %v327_v13  ;;  %v583_v25 = vrot.slane (!%p1278_p4), %v581_v19, 1  ;;  %v592_v37 = vor.u32 (!%p1278_p4), %v590_v27, %v588_v21  ;;  %v598_v44 = vshrl.u32 (!%p1278_p4), %v1897_v23, 16  ;;  %v838_v49 = vld [vmem:[%s2174_s2] sm:$0xff] (!%p1278_p4)  ;;  %v839_v58 = vld [vmem:[%s2174_s2 + $0x8] sm:$0xff] (!%p1278_p4)  ;;  %v841_v60 = vld [vmem:[%s2174_s2 + $0x18] sm:$0xff] (!%p1278_p4) }
  0x2d   : > { %1397 = vmatmul.mubr.msk.bf16.vlgmr.msra.gmra.mrb[0].mxu1 %vm362_vm2, %v328_v24  ;;  %v336_v36 = vsel %vm316_vm1, %v331_v30, %v335_v31  ;;  %v596_v38 = vrot.slane %v594_v32, 1  ;;  %v339_v43 = vor.u32 %v337_v35, %v335_v31  ;;  %v343_v46 = vrot.slane %v341_v39, 1  ;;  %v1945_v57 = vld [vmem:[%s1852_s6 + $0x24] sm:$0x1f]   ;;  %v844_v9 = vld [vmem:[%s2174_s2 + $0x30] sm:$0xff]  ;;  %v845_v13 = vld [vmem:[%s2174_s2 + $0x38] sm:$0xff] }
  0x2e   : > { %1417 = vmatpush3.bf16.msra.mxu1 %v1619_v17  ;;  %v584_v28 = vor.u32 %v583_v25, %v579_v18  ;;  %1400 = vmatprep.mubr.msk.bf16.mxu1 %vm1733_vm0, %v1732_v2  ;;  %v602_v47 = vshll.u32 %v1920_v40, 16  ;;  %v1285_v48 = vcombine.low %v1923_v41, %v287_v42  ;;  %v345_v50 = vshrl.u32 %v1910_v33, 16  ;;  %v842_v1 = vld [vmem:[%s2174_s2 + $0x20] sm:$0xff]  ;;  %v843_v3 = vld [vmem:[%s2174_s2 + $0x28] sm:$0xff] }
  0x2f   : > { %v597_v45 = vsel %vm316_vm1, %v592_v37, %v596_v38  ;;  %v1734_v51 = vmov 0   ;;  %v344_v53 = vsel %vm316_vm1, %v339_v43, %v343_v46  ;;  %v600_v54 = vor.u32 %v598_v44, %v596_v38  ;;  %v846_v15 = vld [vmem:[%s2174_s2 + $0x40] sm:$0xff] }
  0x30   : > { %v589_v34 = vsel %vm316_vm1, %v584_v28, %v588_v21  ;;  %1613 = vset.pattern.permute.xlu0 %v1734_v51  ;;  %v604_v55 = vrot.slane %v602_v47, 1  ;;  %v349_v56 = vshll.u32 %v1285_v48, 16  ;;  %1614 = vset.pattern.permute.xlu1 %v1734_v51  ;;  %v347_v59 = vor.u32 %v345_v50, %v343_v46  ;;  %v719_v18 = vld [vmem:[%s1852_s6 + $0x4] sm:$0xe]  ;;  %s901_s6 = smul.u32 72, %s1713_s21 }
  0x31   : > { %1441 = vmatmul.mubr.msk.bf16.vlgmr.msra.gmra.mrb[0].mxu0 %vm362_vm2, %v589_v34  ;;  %849 = vperm.xlu0 %1613, %v838_v49   ;;  %v606_v63 = vshrl.u32 %v1920_v40, 16  ;;  %v610_v0 = vshll.u32 %v1945_v57, 16  ;;  %v353_v12 = vshrl.u32 %v1285_v48, 16  ;;  %v614_v17 = vshrl.u32 %v1945_v57, 16 }
  0x32   : > { %1461 = vmatpush3.bf16.msra.mxu0 %v1622_v29  ;;  %1444 = vmatprep.mubr.msk.bf16.mxu0 %vm1733_vm0, %v1732_v2  ;;  %v605_v61 = vsel %vm316_vm1, %v600_v54, %v604_v55  ;;  %v351_v62 = vrot.slane %v349_v56, 1  ;;  %v1314_v21 = vcombine.low %v719_v18, %v1885_v11  ;;  %v728_v24 = vrot.slane %v1882_v10, 1  ;;  %s2035_s30 = scalar_lea.vmem [#allocation2], %s901_s6 }
  0x33   : > { %859 = vperm.xlu1 %1614, %v840_v52   ;;  %v608_v7 = vor.u32 %v606_v63, %v604_v55  ;;  %v612_v8 = vrot.slane %v610_v0, 1  ;;  %vm726_vm3 = vcmask 1046528   ;;  %v730_v11 = vrot.slane %v1897_v23, 1 }
  0x34   : > { %v352_v6 = vsel %vm316_vm1, %v347_v59, %v351_v62  ;;  %v355_v16 = vor.u32 %v353_v12, %v351_v62  ;;  %v727_v22 = vrot.slane %v1314_v21, 1 }
  0x35   : > { %1401 = vmatmul.mubr.msk.bf16.gmra.mrb[4].mxu1 %vm362_vm2, %v336_v36  ;;  %854 = vperm.xlu0 %1613, %v839_v58   ;;  %v613_v14 = vsel %vm316_vm1, %v608_v7, %v612_v8  ;;  %v616_v19 = vor.u32 %v614_v17, %v612_v8  ;;  %v731_v10 = vsel %vm726_vm3, %v728_v24, %v730_v11 }
  0x36   : > { %1404 = vmatprep.mubr.msk.bf16.mxu1 %vm1733_vm0, %v1732_v2  ;;  %v729_v25 = vsel %vm726_vm3, %v727_v22, %v728_v24 }
  0x37   : > { %864 = vperm.xlu1 %1614, %v841_v60  }
  0x39   : > { %1445 = vmatmul.mubr.msk.bf16.gmra.mrb[4].mxu0 %vm362_vm2, %v597_v45  ;;  %869 = vperm.xlu0 %1613, %v842_v1  }
  0x3a   : > { %1448 = vmatprep.mubr.msk.bf16.mxu0 %vm1733_vm0, %v1732_v2 }
  0x3b   : > { %874 = vperm.xlu1 %1614, %v843_v3  }
  0x3d   : > { %1405 = vmatmul.mubr.msk.bf16.gmra.mrb[8].mxu1 %vm362_vm2, %v344_v53  ;;  %879 = vperm.xlu0 %1613, %v844_v9  }
  0x3e   : > { %1408 = vmatprep.mubr.msk.bf16.mxu1 %vm1733_vm0, %v1732_v2 }
  0x3f   : > { %884 = vperm.xlu1 %1614, %v845_v13  }
  0x41   : > { %1449 = vmatmul.mubr.msk.bf16.gmra.mrb[8].mxu0 %vm362_vm2, %v605_v61  ;;  %889 = vperm.xlu0 %1613, %v846_v15  }
  0x42   : > { %1452 = vmatprep.mubr.msk.bf16.mxu0 %vm1733_vm0, %v1732_v2 }
  0x45   : > { %1409 = vmatmul.mubr.msk.bf16.gmra.mrb[12].mxu1 %vm362_vm2, %v352_v6 }
  0x46   : > { %1412 = vmatprep.mubr.msk.bf16.mxu1 %vm1733_vm0, %v1732_v2 }
  0x49   : > { %1453 = vmatmul.mubr.msk.bf16.gmra.mrb[12].mxu0 %vm362_vm2, %v613_v14 }
  0x4a   : > { %1456 = vmatprep.mubr.msk.bf16.mxu0 %vm1733_vm0, %v1732_v2 }
  0x4d   : > { %1413 = vmatmul.mubr.msk.bf16.gmra.mrb[16].mxu1 %vm362_vm2, %v355_v16 }
  0x4e   : > { %1418 = vmatprep.mubr.msk.bf16.mxu1 %vm1733_vm0, %v1732_v2 }
  0x51   : > { %1457 = vmatmul.mubr.msk.bf16.gmra.mrb[16].mxu0 %vm362_vm2, %v616_v19 }
  0x52   : > { %1462 = vmatprep.mubr.msk.bf16.mxu0 %vm1733_vm0, %v1732_v2 }
  0x55   : > { %1419 = vmatmul.mubr.msk.bf16.vlgmr.msra.gmra.mrb[0].mxu1 %vm362_vm2, %v1869_v4  ;;  %v732_v4 = vrot.slane %v1920_v40, 1 }
  0x56   : > { %1422 = vmatprep.mubr.msk.bf16.mxu1 %vm1733_vm0, %v1732_v2 }
  0x57   : > { %v733_v23 = vsel %vm726_vm3, %v730_v11, %v732_v4 }
  0x59   : > { %1463 = vmatmul.mubr.msk.bf16.vlgmr.msra.gmra.mrb[0].mxu0 %vm362_vm2, %v729_v25 }
  0x5a   : > { %1466 = vmatprep.mubr.msk.bf16.mxu0 %vm1733_vm0, %v1732_v2 }
  0x5d   : > { %1423 = vmatmul.mubr.msk.bf16.gmra.mrb[4].mxu1 %vm362_vm2, %v1872_v5  ;;  %v734_v5 = vrot.slane %v1945_v57, 1 }
  0x5e   : > { %1426 = vmatprep.mubr.msk.bf16.mxu1 %vm1733_vm0, %v1732_v2 }
  0x5f   : > { %v735_v26 = vsel %vm726_vm3, %v732_v4, %v734_v5 }
  0x61   : > { %1467 = vmatmul.mubr.msk.bf16.gmra.mrb[4].mxu0 %vm362_vm2, %v731_v10 }
  0x62   : > { %1470 = vmatprep.mubr.msk.bf16.mxu0 %vm1733_vm0, %v1732_v2 }
  0x65   : > { %1427 = vmatmul.mubr.msk.bf16.gmra.mrb[8].mxu1 %vm362_vm2, %v1893_v20  ;;  %v1292_v20 = vcombine.low %v1923_v41, %v1923_v41 }
  0x66   : > { %1430 = vmatprep.mubr.msk.bf16.mxu1 %vm1733_vm0, %v1732_v2 }
  0x69   : > { %1471 = vmatmul.mubr.msk.bf16.gmra.mrb[8].mxu0 %vm362_vm2, %v733_v23 }
  0x6a   : > { %1474 = vmatprep.mubr.msk.bf16.mxu0 %vm1733_vm0, %v1732_v2 }
  0x6d   : > { %1431 = vmatmul.mubr.msk.bf16.gmra.mrb[12].mxu1 %vm362_vm2, %v1910_v33 }
  0x6e   : > { %1434 = vmatprep.mubr.msk.bf16.mxu1 %vm1733_vm0, %v1732_v2 }
  0x71   : > { %1475 = vmatmul.mubr.msk.bf16.gmra.mrb[12].mxu0 %vm362_vm2, %v735_v26 }
  0x72   : > { %1478 = vmatprep.mubr.msk.bf16.mxu0 %vm1733_vm0, %v1732_v2 }
  0x75   : > { %1435 = vmatmul.mubr.msk.bf16.gmra.mrb[16].mxu1 %vm362_vm2, %v1292_v20 }
  0x79   : > { %1479 = vmatmul.mubr.msk.bf16.gmra.mrb[16].mxu0 %vm362_vm2, %v734_v5 }
  0xb0   : > { %v850_v27 = vpop.permute.xlu0 %849 }
  0xb2   : > { %v860_v40 = vpop.permute.xlu1 %859 }
  0xb4   : > { %v855_v36 = vpop.permute.xlu0 %854 }
  0xb6   : > { %v865_v50 = vpop.permute.xlu1 %864 }
  0xb8   : > { %v870_v0 = vpop.permute.xlu0 %869 }
  0xba   : > { %v875_v8 = vpop.permute.xlu1 %874 }
  0xbc   : > { %v880_v22 = vpop.permute.xlu0 %879 }
  0xbe   : > { %v885_v4 = vpop.permute.xlu1 %884 }
 0x128   : > { %v502_v28 = vpop.f32.mrb[0].mxu1 }
 0x129   : > { %v1420_v29 = vpop.f32.mrb[1].mxu1 }
 0x12a   : > { %v505_v30 = vpop.f32.mrb[2].mxu1 }
 0x12b   : > { %v1421_v31 = vpop.f32.mrb[3].mxu1 }
 0x12c   : > { %v791_v32 = vpop.f32.mrb[0].mxu0 }
 0x12d   : > { %v1482_v33 = vadd.f32 %v791_v32, %v502_v28  ;;  %v1464_v34 = vpop.f32.mrb[1].mxu0 }
 0x12e   : > { %v794_v35 = vpop.f32.mrb[2].mxu0 }
 0x12f   : > { %v892_v37 = vmul.f32 %v1482_v33, %v850_v27  ;;  %v1483_v38 = vadd.f32 %v794_v35, %v505_v30  ;;  %v1465_v39 = vpop.f32.mrb[3].mxu0  ;;  %v890_v33 = vpop.permute.xlu0 %889 }
 0x130   : > { %v510_v2 = vpop.f32.mrb[4].mxu1 }
 0x131   : > { %903 = vst [vmem:[%s2035_s30] sm:$0xff] %v892_v37  ;;  %v893_v41 = vmul.f32 %v1483_v38, %v855_v36  ;;  %v1424_v42 = vpop.f32.mrb[5].mxu1 }
 0x132   : > { %v513_v43 = vpop.f32.mrb[6].mxu1  ;;  %v912_v42 = vld [vmem:[#allocation3] sm:$0x1] }
 0x133   : > { %904 = vst [vmem:[%s2035_s30 + $0x8] sm:$0xff] %v893_v41  ;;  %v913_v44 = vadd.f32 %v893_v41, %v892_v37  ;;  %v1425_v45 = vpop.f32.mrb[7].mxu1 }
 0x134   : > { %v799_v46 = vpop.f32.mrb[4].mxu0 }
 0x135   : > { %v1484_v47 = vadd.f32 %v799_v46, %v510_v2  ;;  %v1468_v48 = vpop.f32.mrb[5].mxu0 }
 0x136   : > { %v802_v49 = vpop.f32.mrb[6].mxu0 }
 0x137   : > { %v894_v51 = vmul.f32 %v1484_v47, %v860_v40  ;;  %v1485_v52 = vadd.f32 %v802_v49, %v513_v43  ;;  %v1469_v53 = vpop.f32.mrb[7].mxu0 }
 0x138   : > { %v518_v54 = vpop.f32.mrb[8].mxu1 }
 0x139   : > { %905 = vst [vmem:[%s2035_s30 + $0x10] sm:$0xff] %v894_v51  ;;  %v895_v55 = vmul.f32 %v1485_v52, %v865_v50  ;;  %v914_v56 = vadd.f32 %v913_v44, %v894_v51  ;;  %v1428_v57 = vpop.f32.mrb[9].mxu1 }
 0x13a   : > { %v521_v58 = vpop.f32.mrb[10].mxu1 }
 0x13b   : > { %906 = vst [vmem:[%s2035_s30 + $0x18] sm:$0xff] %v895_v55  ;;  %v915_v59 = vadd.f32 %v914_v56, %v895_v55  ;;  %v1429_v60 = vpop.f32.mrb[11].mxu1 }
 0x13c   : > { %v807_v61 = vpop.f32.mrb[8].mxu0 }
 0x13d   : > { %v1486_v62 = vadd.f32 %v807_v61, %v518_v54  ;;  %v1472_v63 = vpop.f32.mrb[9].mxu0 }
 0x13e   : > { %v810_v1 = vpop.f32.mrb[10].mxu0 }
 0x13f   : > { %v896_v3 = vmul.f32 %v1486_v62, %v870_v0  ;;  %v1487_v6 = vadd.f32 %v810_v1, %v521_v58  ;;  %v1473_v7 = vpop.f32.mrb[11].mxu0 }
 0x140   : > { %v526_v9 = vpop.f32.mrb[12].mxu1 }
 0x141   : > { %907 = vst [vmem:[%s2035_s30 + $0x20] sm:$0xff] %v896_v3  ;;  %v916_v12 = vadd.f32 %v915_v59, %v896_v3  ;;  %v897_v13 = vmul.f32 %v1487_v6, %v875_v8  ;;  %v1432_v14 = vpop.f32.mrb[13].mxu1 }
 0x142   : > { %v529_v15 = vpop.f32.mrb[14].mxu1 }
 0x143   : > { %908 = vst [vmem:[%s2035_s30 + $0x28] sm:$0xff] %v897_v13  ;;  %v917_v16 = vadd.f32 %v916_v12, %v897_v13  ;;  %v1433_v17 = vpop.f32.mrb[15].mxu1 }
 0x144   : > { %v815_v18 = vpop.f32.mrb[12].mxu0 }
 0x145   : > { %v1488_v19 = vadd.f32 %v815_v18, %v526_v9  ;;  %v1476_v21 = vpop.f32.mrb[13].mxu0 }
 0x146   : > { %v818_v24 = vpop.f32.mrb[14].mxu0 }
 0x147   : > { %v898_v25 = vmul.f32 %v1488_v19, %v880_v22  ;;  %v1489_v11 = vadd.f32 %v818_v24, %v529_v15  ;;  %v1477_v10 = vpop.f32.mrb[15].mxu0 }
 0x148   : > { %v534_v23 = vpop.f32.mrb[16].mxu1 }
 0x149   : > { %909 = vst [vmem:[%s2035_s30 + $0x30] sm:$0xff] %v898_v25  ;;  %v918_v5 = vadd.f32 %v917_v16, %v898_v25  ;;  %v899_v26 = vmul.f32 %v1489_v11, %v885_v4  ;;  %v1436_v20 = vpop.f32.mrb[17].mxu1 }
 0x14a   : > { %v537_v27 = vpop.f32.mrb[18].mxu1 }
 0x14b   : > { %910 = vst [vmem:[%s2035_s30 + $0x38] sm:$0xff] %v899_v26  ;;  %v919_v28 = vadd.f32 %v918_v5, %v899_v26  ;;  %v1437_v29 = vpop.f32.mrb[19].mxu1 }
 0x14c   : > { %v823_v30 = vpop.f32.mrb[16].mxu0 }
 0x14d   : > { %v1490_v31 = vadd.f32 %v823_v30, %v534_v23  ;;  %v1480_v32 = vpop.f32.mrb[17].mxu0 }
 0x14e   : > { %v826_v34 = vpop.f32.mrb[18].mxu0 }
 0x14f   : > { %v900_v35 = vmul.f32 %v1490_v31, %v890_v33  ;;  %v1481_v36 = vpop.f32.mrb[19].mxu0 }
 0x151   : > { %911 = vst [vmem:[%s2035_s30 + $0x40] sm:$0xff] %v900_v35  ;;  %v920_v37 = vadd.f32 %v919_v28, %v900_v35 }
 0x153   : > { %v921_v38 = vrot.slane %v920_v37, 4 }
 0x155   : > { %v922_v39 = vadd.f32 %v921_v38, %v920_v37 }
 0x157   : > { %v923_v40 = vrot.slane %v922_v39, 2 }
 0x159   : > { %v924_v2 = vadd.f32 %v923_v40, %v922_v39 }
 0x15b   : > { %v925_v41 = vrot.slane %v924_v2, 1 }
 0x15d   : > { %v926_v43 = vadd.f32 %v925_v41, %v924_v2 }
 0x15f   : > { %v927_v44 = vadd.f32 %v926_v43, %v912_v42 }
 0x161   : > { %928 = vst [vmem:[#allocation3] sm:$0x1] %v927_v44 }
 0x162 PF: > { %p929_p5 = scmp.eq.s32.totalorder %s1717_s22, 1 }
 0x164   : > { %p930_p7 = pnand %p929_p5, %p267_p1 }
 0x165   : > { %v1735_v47 = vmov (!%p930_p7), 0.0  }
 0x166   : > { %933 = sbr.rel (%p930_p7) target bundleno = 365 (0x16d), region = 52  ;;  %937 = vst [vmem:[#allocation4] sm:$0x1] (!%p930_p7), %v1735_v47 }
 0x168   : > { %v934_v45 = vld [vmem:[#allocation3] sm:$0x1] (!%p930_p7) }
 0x169   : > { %v935_v46 = vmul.f32 (!%p930_p7), 0.0078125, %v934_v45 }
 0x16b   : > { %936 = vst [vmem:[#allocation5] sm:$0x1] (!%p930_p7), %v935_v46 }
 0x16d PF: > { %p1321_p8 = scmp.ne.s32.totalorder %s1717_s22, 1 }
 0x16e   : > { %v970_v48 = vld [vmem:[%s2174_s2 + $0x10] sm:$0xff] (!%p1321_p8)  ;;  %v968_v49 = vld [vmem:[%s2174_s2] sm:$0xff] (!%p1321_p8)  ;;  %v1736_v50 = vmov (!%p1321_p8), 0   ;;  %v971_v51 = vld [vmem:[%s2174_s2 + $0x18] sm:$0xff] (!%p1321_p8)  ;;  %s941_s6 = smul.u32 (!%p1321_p8), 72, %s1713_s21 }
 0x16f   : > { %940 = sbr.rel (%p1321_p8) target bundleno = 535 (0x217), region = 56  ;;  %1632 = vset.pattern.permute.xlu1 (!%p1321_p8), %v1736_v50  ;;  %1631 = vset.pattern.permute.xlu0 (!%p1321_p8), %v1736_v50  ;;  %v969_v52 = vld [vmem:[%s2174_s2 + $0x8] sm:$0xff] (!%p1321_p8)  ;;  %v972_v54 = vld [vmem:[%s2174_s2 + $0x20] sm:$0xff] (!%p1321_p8)  ;;  %v975_v55 = vld [vmem:[%s2174_s2 + $0x38] sm:$0xff] (!%p1321_p8) }
 0x170   : > { %989 = vperm.xlu1 (!%p1321_p8), %1632, %v970_v48   ;;  %979 = vperm.xlu0 (!%p1321_p8), %1631, %v968_v49   ;;  %v973_v53 = vld [vmem:[%s2174_s2 + $0x28] sm:$0xff] (!%p1321_p8)  ;;  %v974_v56 = vld [vmem:[%s2174_s2 + $0x30] sm:$0xff] (!%p1321_p8)  ;;  %v976_v57 = vld [vmem:[%s2174_s2 + $0x40] sm:$0xff] (!%p1321_p8)  ;;  %s2078_s30 = scalar_lea.vmem (!%p1321_p8), [#allocation2], %s941_s6 }
 0x171   : > { %v943_v59 = vld [vmem:[%s2078_s30] sm:$0xff] (!%p1321_p8)  ;;  %v945_v60 = vld [vmem:[%s2078_s30 + $0x10] sm:$0xff] (!%p1321_p8)  ;;  %v944_v61 = vld [vmem:[%s2078_s30 + $0x8] sm:$0xff] (!%p1321_p8) }
 0x172   : > { %v1322_v58 = vld [vmem:[#allocation5] ss:$0 sm:$0xff] (!%p1321_p8)  ;;  %v946_v1 = vld [vmem:[%s2078_s30 + $0x18] sm:$0xff] (!%p1321_p8)  ;;  %v947_v7 = vld [vmem:[%s2078_s30 + $0x20] sm:$0xff] (!%p1321_p8) }
 0x173   : > { %v959_v62 = vsub.f32 (!%p1321_p8), %v943_v59, %v1322_v58  ;;  %v961_v3 = vsub.f32 (!%p1321_p8), %v945_v60, %v1322_v58  ;;  %v960_v6 = vsub.f32 (!%p1321_p8), %v944_v61, %v1322_v58  ;;  %v962_v9 = vsub.f32 (!%p1321_p8), %v946_v1, %v1322_v58  ;;  %v948_v14 = vld [vmem:[%s2078_s30 + $0x28] sm:$0xff] (!%p1321_p8)  ;;  %v949_v18 = vld [vmem:[%s2078_s30 + $0x30] sm:$0xff] (!%p1321_p8)  ;;  %v950_v10 = vld [vmem:[%s2078_s30 + $0x38] sm:$0xff] (!%p1321_p8) }
 0x174   : > { %994 = vperm.xlu1 (!%p1321_p8), %1632, %v971_v51   ;;  %984 = vperm.xlu0 (!%p1321_p8), %1631, %v969_v52   ;;  %v963_v17 = vsub.f32 (!%p1321_p8), %v947_v7, %v1322_v58  ;;  %v964_v24 = vsub.f32 (!%p1321_p8), %v948_v14, %v1322_v58  ;;  %v965_v26 = vsub.f32 (!%p1321_p8), %v949_v18, %v1322_v58  ;;  %v951_v20 = vld [vmem:[%s2078_s30 + $0x40] sm:$0xff] (!%p1321_p8) }
 0x175   : > { %v966_v30 = vsub.f32 (!%p1321_p8), %v950_v10, %v1322_v58  ;;  %v967_v36 = vsub.f32 (!%p1321_p8), %v951_v20, %v1322_v58 }
 0x178   : > { %1004 = vperm.xlu1 %1632, %v973_v53   ;;  %999 = vperm.xlu0 %1631, %v972_v54   ;;  %v1031_v53 = vld [vmem:[#allocation4] sm:$0x1] }
 0x17c   : > { %1014 = vperm.xlu1 %1632, %v975_v55   ;;  %1009 = vperm.xlu0 %1631, %v974_v56  }
 0x180   : > { %1019 = vperm.xlu0 %1631, %v976_v57  }
 0x1ef   : > { %v990_v63 = vpop.permute.xlu1 %989  ;;  %v980_v0 = vpop.permute.xlu0 %979 }
 0x1f0   : > { %v1022_v8 = vmul.f32 %v980_v0, %v959_v62  ;;  %v1024_v15 = vmul.f32 %v990_v63, %v961_v3 }
 0x1f2   : > { %v1032_v19 = vmul.f32 %v1022_v8, %v1022_v8  ;;  %v1034_v4 = vmul.f32 %v1024_v15, %v1024_v15 }
 0x1f3   : > { %v995_v12 = vpop.permute.xlu1 %994  ;;  %v985_v13 = vpop.permute.xlu0 %984 }
 0x1f4   : > { %v1023_v16 = vmul.f32 %v985_v13, %v960_v6  ;;  %v1025_v21 = vmul.f32 %v995_v12, %v962_v9 }
 0x1f6   : > { %v1033_v22 = vmul.f32 %v1023_v16, %v1023_v16  ;;  %v1035_v27 = vmul.f32 %v1025_v21, %v1025_v21 }
 0x1f7   : > { %v1005_v25 = vpop.permute.xlu1 %1004  ;;  %v1000_v11 = vpop.permute.xlu0 %999 }
 0x1f8   : > { %v1041_v23 = vadd.f32 %v1033_v22, %v1032_v19  ;;  %v1026_v5 = vmul.f32 %v1000_v11, %v963_v17  ;;  %v1027_v29 = vmul.f32 %v1005_v25, %v964_v24 }
 0x1fa   : > { %v1042_v28 = vadd.f32 %v1041_v23, %v1034_v4  ;;  %v1036_v33 = vmul.f32 %v1026_v5, %v1026_v5  ;;  %v1037_v37 = vmul.f32 %v1027_v29, %v1027_v29 }
 0x1fb   : > { %v1015_v31 = vpop.permute.xlu1 %1014  ;;  %v1010_v32 = vpop.permute.xlu0 %1009 }
 0x1fc   : > { %v1043_v34 = vadd.f32 %v1042_v28, %v1035_v27  ;;  %v1028_v35 = vmul.f32 %v1010_v32, %v965_v26  ;;  %v1029_v39 = vmul.f32 %v1015_v31, %v966_v30 }
 0x1fe   : > { %v1044_v38 = vadd.f32 %v1043_v34, %v1036_v33  ;;  %v1038_v2 = vmul.f32 %v1028_v35, %v1028_v35  ;;  %v1039_v43 = vmul.f32 %v1029_v39, %v1029_v39 }
 0x1ff   : > { %v1020_v40 = vpop.permute.xlu0 %1019 }
 0x200   : > { %v1045_v41 = vadd.f32 %v1044_v38, %v1037_v37  ;;  %v1030_v42 = vmul.f32 %v1020_v40, %v967_v36 }
 0x202   : > { %v1046_v44 = vadd.f32 %v1045_v41, %v1038_v2  ;;  %v1040_v45 = vmul.f32 %v1030_v42, %v1030_v42 }
 0x204   : > { %v1047_v46 = vadd.f32 %v1046_v44, %v1039_v43 }
 0x206   : > { %v1048_v47 = vadd.f32 %v1047_v46, %v1040_v45 }
 0x208   : > { %v1049_v48 = vrot.slane %v1048_v47, 4 }
 0x20a   : > { %v1050_v49 = vadd.f32 %v1049_v48, %v1048_v47 }
 0x20c   : > { %v1051_v50 = vrot.slane %v1050_v49, 2 }
 0x20e   : > { %v1052_v51 = vadd.f32 %v1051_v50, %v1050_v49 }
 0x210   : > { %v1053_v52 = vrot.slane %v1052_v51, 1 }
 0x212   : > { %v1054_v54 = vadd.f32 %v1053_v52, %v1052_v51 }
 0x214   : > { %v1055_v55 = vadd.f32 %v1054_v54, %v1031_v53 }
 0x216   : > { %1056 = vst [vmem:[#allocation4] sm:$0x1] %v1055_v55 }
 0x217 PF: > { %p1057_p9 = scmp.eq.s32.totalorder %s1717_s22, 2 }
 0x219   : > { %p1058_p11 = pnand %p1057_p9, %p267_p1 }
 0x21a   : > { %v1065_v60 = vld [vmem:[%s2175_s3] sm:$0x1] (!%p1058_p11)  ;;  %v1071_v62 = vld [vmem:[#allocation5] sm:$0x1] (!%p1058_p11) }
 0x21b   : > { %1061 = sbr.rel (%p1058_p11) target bundleno = 566 (0x236), region = 60  ;;  %v1070_v0 = vld [vmem:[%s2176_s4] sm:$0x1] (!%p1058_p11) }
 0x21d   : > { %v1062_v56 = vld [vmem:[#allocation4] sm:$0x1] (!%p1058_p11) }
 0x21e   : > { %v1063_v57 = vmul.f32 (!%p1058_p11), 0.0078125, %v1062_v56 }
 0x220   : > { %v1064_v58 = vmax.f32 (!%p1058_p11), %v1063_v57, 0.0 }
 0x222   : > { %v1066_v59 = vadd.f32 1e-05, %v1064_v58 }
 0x224   : > { %1633 = vrsqrt.f32 %v1066_v59 }
 0x22e   : > { %v1634_v61 = vpop.eup %1633 }
 0x22f   : > { %v1068_v63 = vmul.f32 %v1634_v61, %v1065_v60 }
 0x231   : > { %1069 = vst [vmem:[#allocation6] sm:$0x1] %v1068_v63  ;;  %v1072_v1 = vmul.f32 %v1071_v62, %v1068_v63 }
 0x233   : > { %v1073_v3 = vsub.f32 %v1070_v0, %v1072_v1 }
 0x235   : > { %1074 = vst [vmem:[#allocation7] sm:$0x1] %v1073_v3 }
 0x236 PF: > { %p1323_p12 = scmp.ne.s32.totalorder %s1717_s22, 2 }
 0x237   : > { %s1078_s16 = smul.u32 (!%p1323_p12), 72, %s1713_s21 }
 0x238   : > { %1077 = sbr.rel (%p1323_p12) target bundleno = 586 (0x24a), region = 64  ;;  %v1324_v6 = vld [vmem:[#allocation6] ss:$0 sm:$0xff] (!%p1323_p12) }
 0x239   : > { %s1079_s17 = scalar_lea.vmem (!%p1323_p12), [#allocation2], %s1078_s16 }
 0x23a   : > { %v1080_v8 = vld [vmem:[%s1079_s17] sm:$0xff] (!%p1323_p12)  ;;  %v1081_v9 = vld [vmem:[%s1079_s17 + $0x8] sm:$0xff] (!%p1323_p12)  ;;  %v1082_v12 = vld [vmem:[%s1079_s17 + $0x10] sm:$0xff] (!%p1323_p12) }
 0x23b   : > { %v1096_v13 = vmul.f32 (!%p1323_p12), %v1324_v6, %v1080_v8  ;;  %v1097_v14 = vmul.f32 (!%p1323_p12), %v1324_v6, %v1081_v9  ;;  %v1083_v15 = vld [vmem:[%s1079_s17 + $0x18] sm:$0xff] (!%p1323_p12)  ;;  %v1098_v16 = vmul.f32 (!%p1323_p12), %v1324_v6, %v1082_v12  ;;  %v1084_v17 = vld [vmem:[%s1079_s17 + $0x20] sm:$0xff] (!%p1323_p12)  ;;  %v1085_v18 = vld [vmem:[%s1079_s17 + $0x28] sm:$0xff] (!%p1323_p12) }
 0x23c   : > { %v1325_v7 = vld [vmem:[#allocation7] ss:$0 sm:$0xff] (!%p1323_p12)  ;;  %v1099_v19 = vmul.f32 (!%p1323_p12), %v1324_v6, %v1083_v15  ;;  %v1100_v21 = vmul.f32 (!%p1323_p12), %v1324_v6, %v1084_v17  ;;  %v1101_v22 = vmul.f32 (!%p1323_p12), %v1324_v6, %v1085_v18  ;;  %v1087_v25 = vld [vmem:[%s1079_s17 + $0x38] sm:$0xff] (!%p1323_p12)  ;;  %v1088_v28 = vld [vmem:[%s1079_s17 + $0x40] sm:$0xff] (!%p1323_p12) }
 0x23d   : > { %v1086_v24 = vld [vmem:[%s1079_s17 + $0x30] sm:$0xff] (!%p1323_p12)  ;;  %v1112_v11 = vadd.f32 (!%p1323_p12), %v1325_v7, %v1096_v13  ;;  %v1113_v10 = vadd.f32 (!%p1323_p12), %v1325_v7, %v1097_v14  ;;  %v1114_v4 = vadd.f32 (!%p1323_p12), %v1325_v7, %v1098_v16  ;;  %v1103_v27 = vmul.f32 (!%p1323_p12), %v1324_v6, %v1087_v25 }
 0x23e   : > { %v1102_v23 = vmul.f32 (!%p1323_p12), %v1324_v6, %v1086_v24  ;;  %v1115_v5 = vadd.f32 (!%p1323_p12), %v1325_v7, %v1099_v19  ;;  %v1116_v26 = vadd.f32 (!%p1323_p12), %v1325_v7, %v1100_v21  ;;  %v1117_v20 = vadd.f32 (!%p1323_p12), %v1325_v7, %v1101_v22 }
 0x23f   : > { %v1121_v29 = vmax.f32 %v1112_v11, 0.0  ;;  %v1122_v30 = vmax.f32 %v1113_v10, 0.0  ;;  %v1123_v31 = vmax.f32 %v1114_v4, 0.0  ;;  %v1119_v36 = vadd.f32 %v1325_v7, %v1103_v27 }
 0x240   : > { %v1118_v32 = vadd.f32 %v1325_v7, %v1102_v23  ;;  %v1124_v33 = vmax.f32 %v1115_v5, 0.0  ;;  %v1125_v34 = vmax.f32 %v1116_v26, 0.0  ;;  %v1126_v35 = vmax.f32 %v1117_v20, 0.0 }
 0x241   : > { %v1350_v37 = vpack.c.bf16 %v1122_v30, %v1121_v29  ;;  %v1104_v39 = vmul.f32 %v1324_v6, %v1088_v28  ;;  %v1128_v41 = vmax.f32 %v1119_v36, 0.0 }
 0x242   : > { %v1127_v38 = vmax.f32 %v1118_v32, 0.0  ;;  %v1355_v40 = vpack.c.bf16 %v1124_v33, %v1123_v31  ;;  %v1360_v2 = vpack.c.bf16 %v1126_v35, %v1125_v34 }
 0x243   : > { %1351 = vst [vmem:[%s1854_s9] sm:$0xff] %v1350_v37   ;;  %v1120_v42 = vadd.f32 %v1325_v7, %v1104_v39 }
 0x244   : > { %1367 = vst [vmem:[%s1854_s9 + $0x8] sm:$0xff] %v1355_v40   ;;  %1368 = vst [vmem:[%s1854_s9 + $0x10] sm:$0xff] %v1360_v2   ;;  %v1365_v43 = vpack.c.bf16 %v1128_v41, %v1127_v38 }
 0x245   : > { %v1129_v44 = vmax.f32 %v1120_v42, 0.0 }
 0x246   : > { %1369 = vst [vmem:[%s1854_s9 + $0x18] sm:$0xff] %v1365_v43  }
 0x247   : > { %v1346_v45 = vpack.c.bf16 %v1129_v44, %v1129_v44 }
 0x249   : > { %1175 = vst [vmem:[%s1854_s9 + $0x20] sm:$0xf] %v1346_v45 }
 0x24a PF: > { %s1193_s26 = sshll.u32 %s1854_s9, 4  ;;  %s2120_s15 = scalar_lea.sflag [#allocation9], %s248_s14  ;;  %s2111_s26 = int_to_ptr.vmem [resolvable:$true] %s1193_s26 }
 0x24b   : > { %s1185_s29 = scalar_select %p1057_p9, 1, 0 }
 0x24c   : > { %s1635_s16 = scalar_lea.vmem %s2111_s26, 576 }
 0x24d   : > { %s1186_s6 = smul.u32 %s1713_s21, %s1185_s29  ;;  %p1636_p13 = scmp.ne.s32.totalorder %s2111_s26, %s1635_s16 }
 0x24e   : > { %s1737_s21 = smov [#allocation8]  }
 0x24f   : > { %s1533_s30 = smul.u32 576, %s1186_s6  ;;  %p1637_p0 = pnand %p1636_p13, %p1825_p6 }
 0x250   : > { %s1639_s22 = sshll.u32 %s1737_s21, 4  ;;  %s1640_s22 = int_to_ptr.vmem [resolvable:$false] %s1639_s22 }
 0x251   : > { %s2116_s12 = scalar_lea.hbm %s2177_s5, %s1533_s30  ;;  %p1638_p1 = pneg %p1637_p0 }
 0x252   : > { %s1641_s9 = scalar_lea.vmem %s1640_s22, 1152  ;;  %p1642_p2 = scmp.lt.s32.totalorder %s2111_s26, %s1640_s22 }
 0x253   : > { %p1643_p3 = scmp.lt.s32.totalorder %s1641_s9, %s1635_s16 }
 0x255   : > { %p1644_p4 = por %p1643_p3, %p1642_p2 }
 0x257   : > { %p1645_p5 = pnand %p1644_p4, %p1638_p1 }
 0x259   : > { %1648 = shalt.err (!%p1645_p5)
}
 0x25a   : > { %s1649_s14 = scalar_lea.hbm %s2116_s12, 576  ;;  %s1653_s6 = scalar_lea.hbm %s2177_s5, 1152 }
 0x25b   : > { %p1650_p7 = scmp.ne.s32.totalorder %s2116_s12, %s1649_s14  ;;  %p1654_p11 = scmp.lt.u32.totalorder %s2116_s12, %s2177_s5 }
 0x25c   : > { %p1655_p12 = scmp.lt.u32.totalorder %s1653_s6, %s1649_s14  ;;  %p1657_p0 = scmp.lt.u32.totalorder %s1649_s14, %s2116_s12 }
 0x25d   : > { %p1651_p8 = pnand %p1650_p7, %p1825_p6 }
 0x25e   : > { %p1656_p13 = por %p1655_p12, %p1654_p11 }
 0x25f   : > { %p1652_p9 = pneg %p1651_p8 }
 0x260   : > { %p1658_p1 = por %p1657_p0, %p1656_p13 }
 0x262   : > { %p1659_p2 = pnand %p1658_p1, %p1652_p9 }
 0x264   : > { %1662 = shalt.err (!%p1659_p2)
}
 0x265   : > { %s1738_s11 = smov 64   ;;  %s1739_s16 = smov 4  }
 0x266   : > { %1534 = dma.vmem_to_hbm [thread:$0]  (%p1825_p6), %s2111_s26, 576, %s2116_s12, %s2120_s15, %s1738_s11, %s1738_s11, %s1739_s16  }
 0x267 PF: > { %p1540_p3 = scmp.ge.s32.totalorder %s1729_s25, 2  ;;  %s1208_s21 = sand.u32 1, %s1701_s18  }
 0x268   : > { %s1209_s22 = scalar_lea.sflag [#allocation9], %s1208_s21 }
 0x269   : > { %p1537_p4 = pnand %p1540_p3, %p1831_p10 }
 0x26b   : > { %1696 = dma.done.wait (!%p1537_p4), %s1209_s22, 576  }
 0x26c   : > { %1698 = vsyncadd (!%p1537_p4), %s1209_s22, 4294966720  ;;  %s18_s25 = sadd.s32 1, %s1729_s25   ;;  %s2180_s18 = smov %s1705_s19 }
 0x26d   : > { %p15_p5 = scmp.ge.s32.totalorder %s18_s25, 8   ;;  %s2181_s19 = smov %s1709_s20 }
 0x26e   : > { %s2182_s20 = smov %s1839_s13  ;;  %s2183_s21 = smov %s1721_s23 }
 0x26f   : > { %s2184_s22 = smov %s1725_s24  ;;  %s2185_s23 = smov %s2188_s27 }
 0x270   : > { %s2186_s24 = smov %s2192_s28  ;;  %17 = sbr.rel (!%p15_p5) target bundleno = 5 (0x5), region = 105 }
 0x277   :  { %1214 = vsyncpa [#allocation9], 1 }
 0x278   :  { %1216 = vsyncpa [#allocation9 + $0x1], 1 }

</bundles_post_ra>
